<compile_context>
chip_gen: v7x
topology: tpu7x:2x2x1
jax: 0.10.0
libtpu: 0.0.40
codegen_flags: <defaults>
</compile_context>

<pallas_src>
import jax
import jax.numpy as jnp
from jax.experimental import pallas as pl
from jax.experimental.pallas import tpu as pltpu

LANES = 128   # TPU lane width; packed parameter slab columns padded to this.
H1 = 32       # fc1 out features
H2 = 16       # fc2 out features


def _round_up(n, m):
    return ((n + m - 1) // m) * m


# ---------------------------------------------------------------------------
# Parameter packing: one contiguous, lane-padded f32 slab (single DMA, stays
# VMEM-resident across the whole grid because its index_map is constant).
#   rows [0, s_rows)                    : w1  (S, 32)  zero-padded to 128 cols
#   rows [s_rows, s_rows+32)            : w2  (32, 16) zero-padded to 128 cols
#   rows [s_rows+32, s_rows+48)         : w3  (16, A)  zero-padded to 128 cols
#   rows [s_rows+48, s_rows+51)         : b1, b2, b3   each padded to (1, 128)
# (s_rows = S rounded up to a multiple of 8; trailing rows padded to a
#  multiple of 8.)  Zero padding keeps the math exact.
# ---------------------------------------------------------------------------
def pack_params(params):
    w1, b1, w2, b2, w3, b3 = params
    S = w1.shape[0]
    s_rows = _round_up(S, 8)

    def pad_to(a, rows):
        a = a.astype(jnp.float32)
        return jnp.pad(a, ((0, rows - a.shape[0]), (0, LANES - a.shape[1])))

    packed = jnp.concatenate(
        [
            pad_to(w1, s_rows),   # (s_rows, 128)
            pad_to(w2, H1),       # (32, 128)
            pad_to(w3, H2),       # (16, 128)
            pad_to(b1, 1),
            pad_to(b2, 1),
            pad_to(b3, 1),
        ],
        axis=0,
    )
    pad_rows = (-packed.shape[0]) % 8
    if pad_rows:
        packed = jnp.pad(packed, ((0, pad_rows), (0, 0)))
    return packed


def _make_kernel(state_space, action_space):
    S = state_space
    A = action_space
    s_rows = _round_up(S, 8)
    off_w2 = s_rows            # multiple of 8
    off_w3 = s_rows + H1       # multiple of 8
    off_b = s_rows + H1 + H2   # multiple of 8

    def kernel(x_ref, p_ref, o_ref):
        x = x_ref[...]                                   # (tb, s_rows)
        w1 = p_ref[0:s_rows, 0:H1]                       # (s_rows, 32)
        w2 = p_ref[off_w2:off_w2 + H1, 0:H2]             # (32, 16)
        w3 = p_ref[off_w3:off_w3 + H2, 0:A]              # (16, A)
        b = p_ref[off_b:off_b + 3, :]                    # (3, 128)
        b1 = b[0:1, 0:H1]
        b2 = b[1:2, 0:H2]
        b3 = b[2:3, 0:A]

        h1 = jnp.maximum(
            jnp.dot(x, w1, preferred_element_type=jnp.float32) + b1, 0.0)   # (tb, 32)
        h2 = jnp.maximum(
            jnp.dot(h1, w2, preferred_element_type=jnp.float32) + b2, 0.0)  # (tb, 16)
        q = jnp.dot(h2, w3, preferred_element_type=jnp.float32) + b3        # (tb, A)
        o_ref[...] = q.astype(o_ref.dtype)               # narrow (action_space) store

    return kernel


def critic_forward(x, packed_params, action_space, *, tb=None):
    """x: (B, state_space) f32.  Returns (B, action_space) f32."""
    B, S = x.shape
    s_rows = _round_up(S, 8)
    if s_rows != S:
        # Only for non-8-aligned state spaces (LunarLander S=8 skips this);
        # keeps the w1 slab slice sublane-aligned.  Zero columns are exact.
        x = jnp.pad(x, ((0, 0), (0, s_rows - S)))

    if tb is None:
        # Large tiles amortize the ~0.35 us per-grid-step overhead.  4096 rows
        # keeps the double-buffered (lane-padded) x/out blocks plus the f32
        # intermediates under the 32 MiB default scoped VMEM on v5e/v6e/v7x.
        tb = min(4096, _round_up(B, 8))
    tb = max(8, _round_up(tb, 8))
    num_blocks = pl.cdiv(B, tb)

    out = pl.pallas_call(
        _make_kernel(S, action_space),
        out_shape=jax.ShapeDtypeStruct((B, action_space), jnp.float32),
        grid=(num_blocks,),
        in_specs=[
            # Batch-tiled activations; ragged last block is masked by Pallas
            # (no host-side jnp.pad / extra HBM pass).
            pl.BlockSpec((tb, s_rows), lambda b: (b, 0)),
            # Single packed parameter slab; constant index_map => VMEM-resident,
            # fetched once by a single ~32 KiB DMA.
            pl.BlockSpec(packed_params.shape, lambda b: (0, 0)),
        ],
        # Narrow, real-width output: block last dim == full array dim, so no
        # 128-lane padded slab and no post-kernel slice.
        out_specs=pl.BlockSpec((tb, action_space), lambda b: (b, 0)),
        compiler_params=pltpu.CompilerParams(
            # Batch axis is independent -> sharded across both TensorCores on
            # v7x; no-op on single-TC v5e/v6e.
            dimension_semantics=("parallel",),
        ),
    )(x, packed_params)

    return out


# ---------------------------------------------------------------------------
# Init / reference
# ---------------------------------------------------------------------------
def init_params(key, state_space, action_space):
    """PyTorch-default-like Linear init (uniform +/- 1/sqrt(fan_in)).
    Weights stored as (in, out); biases as (1, out)."""
    def linear(key, fan_in, fan_out):
        kw, kb = jax.random.split(key)
        bound = 1.0 / jnp.sqrt(fan_in)
        w = jax.random.uniform(kw, (fan_in, fan_out), jnp.float32, -bound, bound)
        b = jax.random.uniform(kb, (1, fan_out), jnp.float32, -bound, bound)
        return w, b

    k1, k2, k3 = jax.random.split(key, 3)
    w1, b1 = linear(k1, state_space, H1)
    w2, b2 = linear(k2, H1, H2)
    w3, b3 = linear(k3, H2, action_space)
    return (w1, b1, w2, b2, w3, b3)


def reference_forward(x, params):
    w1, b1, w2, b2, w3, b3 = params
    h1 = jnp.maximum(x @ w1 + b1, 0.0)
    h2 = jnp.maximum(h1 @ w2 + b2, 0.0)
    return h2 @ w3 + b3


if __name__ == "__main__":
    # LunarLander-v2: state_space = 8, action_space = 4.
    state_space, action_space = 8, 4

    key = jax.random.PRNGKey(0)
    k_params, k_x1, k_x2 = jax.random.split(key, 3)
    params = init_params(k_params, state_space, action_space)
    packed = pack_params(params)

    # Case 1: the RL per-step shape (batch=2; single ragged 8-row block).
    x_small = jax.random.normal(k_x1, (2, state_space), dtype=jnp.float32)
    out_small = jax.block_until_ready(
        critic_forward(x_small, packed, action_space))
    ref_small = reference_forward(x_small, params)
    assert out_small.shape == (2, action_space)
    assert jnp.allclose(out_small, ref_small, atol=1e-4, rtol=1e-4), \
        "mismatch vs reference (batch=2)"

    # Case 2: a modest vectorized-env batch exercising the multi-block,
    # pipelined grid path (2 tiles of 128 rows).
    x_big = jax.random.normal(k_x2, (256, state_space), dtype=jnp.float32)
    out_big = jax.block_until_ready(
        critic_forward(x_big, packed, action_space, tb=128))
    ref_big = reference_forward(x_big, params)
    assert out_big.shape == (256, action_space)
    assert jnp.allclose(out_big, ref_big, atol=1e-4, rtol=1e-4), \
        "mismatch vs reference (batch=256)"

    print("KERNEL_OK")
</pallas_src>

<mosaic_0001>
module attributes {stable_mosaic.version = 11 : i64} {
  func.func @kernel(%arg0: i32, %arg1: memref<8x8xf32, #tpu.memory_space<vmem>>, %arg2: memref<64x128xf32, #tpu.memory_space<vmem>>, %arg3: memref<8x4xf32, #tpu.memory_space<vmem>>) attributes {dimension_semantics = [#tpu.dimension_semantics<parallel>], iteration_bounds = array<i64: 1>, scalar_prefetch = 0 : i64, scratch_operands = 0 : i64, tpu.core_type = #tpu.core_type<tc>, window_params = [{transform_indices = @transform_0, window_bounds = array<i64: 8, 8>}, {pipeline_mode = #tpu.pipeline_mode<synchronous>, transform_indices = @transform_1, window_bounds = array<i64: 64, 128>}, {transform_indices = @transform_2, window_bounds = array<i64: 8, 4>}]} {
    %c0 = arith.constant 0 : index
    %c0_0 = arith.constant 0 : index
    %0 = vector.load %arg1[%c0, %c0_0] : memref<8x8xf32, #tpu.memory_space<vmem>>, vector<8x8xf32>
    %c0_1 = arith.constant 0 : index
    %c0_2 = arith.constant 0 : index
    %1 = vector.load %arg2[%c0_1, %c0_2] : memref<64x128xf32, #tpu.memory_space<vmem>>, vector<8x32xf32>
    %c8 = arith.constant 8 : index
    %c0_3 = arith.constant 0 : index
    %2 = vector.load %arg2[%c8, %c0_3] : memref<64x128xf32, #tpu.memory_space<vmem>>, vector<32x16xf32>
    %c40 = arith.constant 40 : index
    %c0_4 = arith.constant 0 : index
    %3 = vector.load %arg2[%c40, %c0_4] : memref<64x128xf32, #tpu.memory_space<vmem>>, vector<16x4xf32>
    %c56 = arith.constant 56 : index
    %c0_5 = arith.constant 0 : index
    %4 = vector.load %arg2[%c56, %c0_5] : memref<64x128xf32, #tpu.memory_space<vmem>>, vector<3x128xf32>
    %5 = vector.extract_strided_slice %4 {offsets = [0, 0], sizes = [1, 32], strides = [1, 1]} : vector<3x128xf32> to vector<1x32xf32>
    %6 = vector.extract_strided_slice %4 {offsets = [1, 0], sizes = [1, 16], strides = [1, 1]} : vector<3x128xf32> to vector<1x16xf32>
    %7 = vector.extract_strided_slice %4 {offsets = [2, 0], sizes = [1, 4], strides = [1, 1]} : vector<3x128xf32> to vector<1x4xf32>
    %cst = arith.constant dense<0.000000e+00> : vector<8x32xf32>
    %8 = tpu.matmul %0, %1, %cst {dimension_numbers = #tpu.dot_dimension_numbers<[1], [0], [0], [1], [0, 0, 1, 1], [], []>} : vector<8x8xf32>, vector<8x32xf32>, vector<8x32xf32> -> vector<8x32xf32>
    %9 = vector.broadcast %5 : vector<1x32xf32> to vector<8x32xf32>
    %10 = arith.addf %8, %9 : vector<8x32xf32>
    %cst_6 = arith.constant 0.000000e+00 : f32
    %11 = vector.broadcast %cst_6 : f32 to vector<8x32xf32>
    %12 = arith.maximumf %10, %11 : vector<8x32xf32>
    %cst_7 = arith.constant dense<0.000000e+00> : vector<8x16xf32>
    %13 = tpu.matmul %12, %2, %cst_7 {dimension_numbers = #tpu.dot_dimension_numbers<[1], [0], [0], [1], [0, 0, 1, 1], [], []>} : vector<8x32xf32>, vector<32x16xf32>, vector<8x16xf32> -> vector<8x16xf32>
    %14 = vector.broadcast %6 : vector<1x16xf32> to vector<8x16xf32>
    %15 = arith.addf %13, %14 : vector<8x16xf32>
    %cst_8 = arith.constant 0.000000e+00 : f32
    %16 = vector.broadcast %cst_8 : f32 to vector<8x16xf32>
    %17 = arith.maximumf %15, %16 : vector<8x16xf32>
    %cst_9 = arith.constant dense<0.000000e+00> : vector<8x4xf32>
    %18 = tpu.matmul %17, %3, %cst_9 {dimension_numbers = #tpu.dot_dimension_numbers<[1], [0], [0], [1], [0, 0, 1, 1], [], []>} : vector<8x16xf32>, vector<16x4xf32>, vector<8x4xf32> -> vector<8x4xf32>
    %19 = vector.broadcast %7 : vector<1x4xf32> to vector<8x4xf32>
    %20 = arith.addf %18, %19 : vector<8x4xf32>
    %c0_10 = arith.constant 0 : index
    %c0_11 = arith.constant 0 : index
    %21 = vector.load %arg3[%c0_10, %c0_11] : memref<8x4xf32, #tpu.memory_space<vmem>>, vector<8x4xf32>
    tpu.vector_store %arg3[%c0_10, %c0_11], %20 {strides = array<i32>} : memref<8x4xf32, #tpu.memory_space<vmem>>, vector<8x4xf32>,
    return
  }
  func.func @transform_0(%arg0: i32) -> (i32, i32) {
    %c0_i32 = arith.constant 0 : i32
    %c0_i32_0 = arith.constant 0 : i32
    return %arg0, %c0_i32 : i32, i32
  }
  func.func @transform_1(%arg0: i32) -> (i32, i32) {
    %c0_i32 = arith.constant 0 : i32
    %c0_i32_0 = arith.constant 0 : i32
    %c0_i32_1 = arith.constant 0 : i32
    return %c0_i32, %c0_i32_0 : i32, i32
  }
  func.func @transform_2(%arg0: i32) -> (i32, i32) {
    %c0_i32 = arith.constant 0 : i32
    %c0_i32_0 = arith.constant 0 : i32
    return %arg0, %c0_i32 : i32, i32
  }
}

</mosaic_0001>

<bundles_post_ra>
// kernel: tpu_custom_call.1
= control target key start
LH: loop header
LB: loop body
LE: loop exit
PB: predicated region body
PF: predicated region fallthrough
CT: control target
= control target key end

     0   :  { %7 = vsyncpa [#allocation3], 0  ;;  %s499_s0 = inlined_call_operand.hbm [shape: f32[2,8], index: 0, kind: input, shape index: {}]   ;;  %s500_s1 = inlined_call_operand.hbm [shape: f32[64,128], index: 1, kind: input, shape index: {}]   ;;  %s501_s2 = inlined_call_operand.hbm [shape: f32[2,4], index: 2, kind: output, shape index: {}]  }
   0x1   :  { %8 = vsyncpa [#allocation6], 0 }
   0x2   :  { %9 = vsyncpa [#allocation4], 0 }
   0x3   :  { %14 = vsyncadd [#allocation3], 96  ;;  %s432_s9 = smov [#allocation2]   ;;  %s360_s13 = scalar_lea.hbm %s499_s0, 32 }
   0x4   :  { %s15_s10 = sshll.u32 %s432_s9, 4  ;;  %p361_p0 = scmp.ne.s32.totalorder %s499_s0, %s360_s13  ;;  %s16_s10 = int_to_ptr.vmem [resolvable:$true] %s15_s10 }
   0x5   :  { %p364_p1 = scmp.lt.u32.totalorder %s360_s13, %s499_s0 }
   0x7   :  { %p366_p2 = pnand %p364_p1, %p361_p0 }
   0x9   :  { %369 = shalt.err (!%p366_p2)
}
   0xa   :  { %s370_s18 = scalar_lea.vmem %s16_s10, 32  ;;  %s374_s19 = scalar_lea.vmem %s16_s10, 128 }
   0xb   :  { %p371_p3 = scmp.ne.s32.totalorder %s16_s10, %s370_s18  ;;  %p375_p4 = scmp.lt.s32.totalorder %s16_s10, %s16_s10 }
   0xc   :  { %p376_p5 = scmp.lt.s32.totalorder %s374_s19, %s370_s18 }
   0xe   :  { %p377_p6 = por %p376_p5, %p375_p4 }
  0x10   :  { %p378_p7 = pnand %p377_p6, %p371_p3 }
  0x12   :  { %381 = shalt.err (!%p378_p7)
}
  0x13   :  { %s433_s20 = smov 32   ;;  %s434_s21 = smov 2  }
  0x14   :  { %21 = dma.hbm_to_vmem [thread:$0]  %s499_s0, 32, %s16_s10, [#allocation3], %s433_s20, %s433_s20, %s434_s21  }
  0x15   :  { %s435_s24 = smov [#allocation5]   ;;  %s382_s28 = scalar_lea.hbm %s500_s1, 1024 }
  0x16   :  { %s27_s25 = sshll.u32 %s435_s24, 4  ;;  %p383_p8 = scmp.ne.s32.totalorder %s500_s1, %s382_s28  ;;  %s28_s25 = int_to_ptr.vmem [resolvable:$true] %s27_s25 }
  0x17   :  { %p386_p9 = scmp.lt.u32.totalorder %s382_s28, %s500_s1 }
  0x19   :  { %p388_p10 = pnand %p386_p9, %p383_p8 }
  0x1b   :  { %391 = shalt.err (!%p388_p10)
}
  0x1c   :  { %s392_s5 = scalar_lea.vmem %s28_s25, 1024  ;;  %p397_p12 = scmp.lt.s32.totalorder %s28_s25, %s28_s25 }
  0x1d   :  { %p393_p11 = scmp.ne.s32.totalorder %s28_s25, %s392_s5  ;;  %p398_p13 = scmp.lt.s32.totalorder %s392_s5, %s392_s5 }
  0x1f   :  { %p399_p0 = por %p398_p13, %p397_p12 }
  0x21   :  { %p400_p1 = pnand %p399_p0, %p393_p11 }
  0x23   :  { %403 = shalt.err (!%p400_p1)
}
  0x24   :  { %s436_s0 = smov 128   ;;  %s437_s6 = smov 8  }
  0x25   :  { %33 = dma.hbm_to_vmem [thread:$0]  %s500_s1, 1024, %s28_s25, [#allocation6], %s436_s0, %s436_s0, %s437_s6  }
  0x26   :  { %426 = dma.done.wait [#allocation3], 128  }
  0x27   :  { %427 = vsyncadd [#allocation3], 4294967168 }
  0x28   :  { %428 = dma.done.wait [#allocation6], 1024  }
  0x29   :  { %429 = vsyncadd [#allocation6], 4294966272  ;;  %v438_v0 = vmov 0.0   ;;  %vm439_vm0 = vmmov 0   ;;  %v440_v1 = vmov 0.0|0.0   ;;  %vm53_vm1 = vcmask 64512  }
  0x2a   :  { %318 = vmatprep.subr.mxu0 %v438_v0  ;;  %320 = vmatprep.mubr.msk.f32.mxu0 %vm439_vm0, %v438_v0  ;;  %v41_v2 = vld [vmem:[#allocation5] sm:$0xff]  ;;  %v40_v3 = vld [vmem:[#allocation2] sm:$0xff]  ;;  %v42_v4 = vld [vmem:[#allocation5 + $0x8] sm:$0xff]  ;;  %v49_v10 = vlaneseq  ;;  %vm132_vm2 = vcmask 261120   ;;  %vm211_vm3 = vcmask 130048   ;;  %vm285_vm4 = vcmask 31744  }
  0x2b   :  { %341 = vmatprep.subr.bf16.mxu1 %v440_v1  ;;  %331 = vmatprep.mubr.msk.f32.mxu1 %vm439_vm0, %v438_v0  ;;  %v43_v5 = vld [vmem:[#allocation5 + $0x10] sm:$0xff]  ;;  %v44_v7 = vld [vmem:[#allocation5 + $0x18] sm:$0xff]  ;;  %v45_v8 = vld [vmem:[#allocation5 + $0x20] sm:$0xff] }
  0x2c   :  { %319 = vmatpush3.msra.mxu0 %v41_v2  ;;  %v342_v6 = vpack.c.bf16 %v43_v5, %v42_v4  ;;  %v345_v9 = vpack.c.bf16 %v45_v8, %v44_v7  ;;  %v50_v11 = vshrl.u32 %v49_v10, 7  ;;  %v48_v13 = vld [vmem:[#allocation5 + $0x38] sm:$0x7]  ;;  %v46_v19 = vld [vmem:[#allocation5 + $0x28] sm:$0xff]  ;;  %v47_v20 = vld [vmem:[#allocation5 + $0x30] sm:$0xff] }
  0x2d   :  { %321 = vmatmul.mubr.msk.f32.vlgmr.msra.gmra.mrb[0].mxu0 %vm53_vm1, %v40_v3  ;;  %347 = vmatprep.subr.bf16.mxu0 %v440_v1  ;;  %v348_v21 = vpack.c.bf16 %v47_v20, %v46_v19 }
  0x2e   :  { %338 = vmatprep.mubr.msk.f32.mxu0 %vm439_vm0, %v438_v0  ;;  %343 = vmatpush3.bf16.msra.mxu1 %v342_v6  ;;  %v51_v12 = vsub.s32 0, %v50_v11  ;;  %v130_v22 = vsub.s32 1, %v50_v11  ;;  %v209_v28 = vsub.s32 2, %v50_v11 }
  0x2f   :  { %344 = vmatprep.subr.bf16.mxu1 %v440_v1  ;;  %349 = vmatpush3.bf16.msra.mxu0 %v348_v21 }
  0x30   :  { %v52_v14 = vrot.slane %v48_v13, %v51_v12  ;;  %v131_v23 = vrot.slane %v48_v13, %v130_v22  ;;  %v210_v29 = vrot.slane %v48_v13, %v209_v28 }
  0x32   :  { %346 = vmatpush3.bf16.msra.mxu1 %v345_v9 }
 0x100   :  { %v123_v15 = vpop.f32.mrb[0].mxu0 }
 0x101   :  { %v124_v16 = vadd.f32 %v123_v15, %v52_v14  ;;  %v322_v17 = vpop.f32.mrb[1].mxu0 }
 0x103   :  { %v127_v18 = vmax.f32 %v124_v16, 0.0 }
 0x105   :  { %332 = vmatmul.mubr.msk.f32.vlgmr.msra.gmra.mrb[0].mxu1 %vm132_vm2, %v127_v18 }
 0x1d8   :  { %v202_v24 = vpop.f32.mrb[0].mxu1 }
 0x1d9   :  { %v203_v25 = vadd.f32 %v202_v24, %v131_v23  ;;  %v333_v26 = vpop.f32.mrb[1].mxu1 }
 0x1db   :  { %v206_v27 = vmax.f32 %v203_v25, 0.0 }
 0x1dd   :  { %339 = vmatmul.mubr.msk.f32.vlgmr.msra.gmra.mrb[2].mxu0 %vm211_vm3, %v206_v27 }
 0x2b0   :  { %v281_v30 = vpop.f32.mrb[2].mxu0 }
 0x2b1   :  { %v282_v31 = vadd.f32 %v281_v30, %v210_v29  ;;  %v340_v32 = vpop.f32.mrb[3].mxu0 }
 0x2b3   :  { %286 = vst.msk [vmem:[#allocation7] sm:$0xff] %vm285_vm4, %v282_v31 }
 0x2b4   :  { %291 = vsyncadd [#allocation4], 96  ;;  %s441_s1 = smov [#allocation7]  }
 0x2b5   :  { %s292_s9 = sshll.u32 %s441_s1, 4  ;;  %s293_s9 = int_to_ptr.vmem [resolvable:$true] %s292_s9 }
 0x2b6   :  { %s404_s10 = scalar_lea.vmem %s293_s9, 32  ;;  %s408_s11 = scalar_lea.vmem %s293_s9, 128 }
 0x2b7   :  { %p405_p2 = scmp.ne.s32.totalorder %s293_s9, %s404_s10  ;;  %p409_p3 = scmp.lt.s32.totalorder %s293_s9, %s293_s9 }
 0x2b8   :  { %p410_p4 = scmp.lt.s32.totalorder %s408_s11, %s404_s10 }
 0x2ba   :  { %p411_p5 = por %p410_p4, %p409_p3 }
 0x2bc   :  { %p412_p6 = pnand %p411_p5, %p405_p2 }
 0x2be   :  { %415 = shalt.err (!%p412_p6)
}
 0x2bf   :  { %s416_s14 = scalar_lea.hbm %s501_s2, 32 }
 0x2c0   :  { %p417_p7 = scmp.ne.s32.totalorder %s501_s2, %s416_s14  ;;  %p420_p8 = scmp.lt.u32.totalorder %s416_s14, %s501_s2 }
 0x2c2   :  { %p422_p9 = pnand %p420_p8, %p417_p7 }
 0x2c4   :  { %425 = shalt.err (!%p422_p9)
}
 0x2c5   :  { %298 = dma.vmem_to_hbm [thread:$0]  %s293_s9, 32, %s501_s2, [#allocation4], %s433_s20, %s433_s20, %s434_s21  }
 0x2c6   :  { %430 = dma.done.wait [#allocation4], 128  }
 0x2c7   :  { %431 = vsyncadd [#allocation4], 4294967168 }
 0x2c8   :  { %302 = vsyncpa [#allocation3], 1 }
 0x2c9   :  { %303 = vsyncpa [#allocation6], 1 }
 0x2ca   :  { %304 = vsyncpa [#allocation4], 1 }

</bundles_post_ra>
